<compile_context>
chip_gen: v5e
topology: v5e:2x2
jax: 0.10.0
libtpu: 0.0.40
codegen_flags: <defaults>
</compile_context>

<pallas_src>
import math

import jax
import jax.numpy as jnp
from jax.experimental import pallas as pl
from jax.experimental.pallas import tpu as pltpu


# ----------------------------------------------------------------------------
# Generation-aware VMEM / tile budgeting
# ----------------------------------------------------------------------------
def _vmem_limit_bytes():
    cap = 64 * 1024 * 1024                      # conservative default = v7x per-TC VMEM
    try:
        info = pltpu.get_tpu_info()
        c = getattr(info, "vmem_capacity_bytes", None)
        if c:
            cap = int(c)
    except Exception:
        pass
    # ~75% of physical, clamped: 48 MiB on v7x, ~96-100 MiB on v5e/v6e.
    return max(32 * 1024 * 1024, min(cap * 3 // 4, 100 * 1024 * 1024))


def _pick_tile_v(V, H, vmem_limit):
    """Largest lane-dense vocab tile (multiple of 256 where possible, >=128) whose
    double-buffered bf16 weight block fits in ~1/3 of the VMEM budget."""
    budget = max(vmem_limit // 3, 1 << 20)
    cap = max(128, budget // (2 * H * 2))       # 2 buffers x H rows x 2 bytes (bf16)
    for cand in (2048, 1024, 512, 256, 128):
        if cand <= cap and V % cand == 0:
            return cand
    return V                                    # tiny / odd vocab: single full-width tile


def _pick_row_tile(rows):
    """Row tile for the K/V projection: tile only when it pays (long memories)."""
    for cand in (512, 256):
        if rows % cand == 0 and rows // cand >= 2:
            return cand
    return rows


# ----------------------------------------------------------------------------
# Pallas kernels
# ----------------------------------------------------------------------------
def _layernorm(y, g, b):
    mu = jnp.mean(y, axis=-1, keepdims=True)
    var = jnp.mean((y - mu) ** 2, axis=-1, keepdims=True)
    return (y - mu) * jax.lax.rsqrt(var + 1e-6) * g + b


def make_kv_proj_kernel(H):
    """One fused K|V projection (all heads, K and V together) per (layer, row-tile):
       [rt, M] @ [M, 2H] on the MXU, then K / V written to two separate outputs."""
    def kernel(mem_ref, w_ref, b_ref, k_ref, v_ref):
        acc = jnp.dot(mem_ref[...], w_ref[0],
                      preferred_element_type=jnp.float32) + b_ref[0]      # [rt, 2H] f32
        k_ref[0] = acc[:, :H].astype(k_ref.dtype)
        v_ref[0] = acc[:, H:].astype(v_ref.dtype)
    return kernel


def make_layer_stack_kernel(head_num, head_size, beam_size):
    """Whole decoder stack in one pallas_call: grid=(layer_num,), activation resident in out_ref."""
    scale = 1.0 / math.sqrt(head_size)
    hd = head_size

    def kernel(x_ref, k_ref, v_ref, mask_ref,
               wq_ref, bq_ref, wo_ref, bo_ref,
               ln1g_ref, ln1b_ref, w1_ref, b1_ref, w2_ref, b2_ref,
               ln2g_ref, ln2b_ref, out_ref, ctx_scr):
        # out_ref has a constant block index across the layer axis -> stays resident in VMEM
        # and carries the activation from layer l to layer l+1.
        @pl.when(pl.program_id(0) == 0)
        def _():
            out_ref[...] = x_ref[...]

        x = out_ref[...]                       # [BB, H] f32 running activation
        BB, H = x.shape
        k = k_ref[0]                           # [B, S, H] bf16 (per-batch, shared by beams)
        v = v_ref[0]                           # [B, S, H] bf16
        B, S, _ = k.shape

        # Hoisted once per layer (NOT per head): mask broadcast, Q reshape, bf16 cast.
        mask_b = mask_ref[...][:, None, :]     # [B, 1, S] additive (-1e9 on padded memory)

        # Fused Q projection over all heads: one [BB,H]@[H,H] MXU matmul.
        q = jnp.dot(x.astype(jnp.bfloat16), wq_ref[0],
                    preferred_element_type=jnp.float32) + bq_ref[0]       # [BB, H] f32
        qb = q.reshape(B, beam_size, H).astype(jnp.bfloat16)              # [B, beam, H] bf16

        # Cross-attention; beams of one batch row share K/V (no tiled memory).
        # Per-head context goes straight into VMEM scratch (static lane slices) -> no lane
        # concat, bounded liveness.  (Multi-batch-dim einsum avoided: Mosaic dot_general
        # supports a single leading batch dim reliably.)
        for h in range(head_num):
            lo = h * hd
            qh = qb[:, :, lo:lo + hd]                                     # [B, beam, hd]
            kh = k[:, :, lo:lo + hd]                                      # [B, S, hd]
            vh = v[:, :, lo:lo + hd]
            s = jnp.einsum('bqd,bsd->bqs', qh, kh,
                           preferred_element_type=jnp.float32) * scale    # [B, beam, S]
            s = s + mask_b
            m = jnp.max(s, axis=-1, keepdims=True)
            e = jnp.exp(s - m)
            # EUP reciprocal (free slot); denom >= 1 after max subtraction, so no clamp needed.
            # NOTE: approx reciprocal slightly perturbs probabilities (fine for greedy decode).
            p = e * pl.reciprocal(jnp.sum(e, axis=-1, keepdims=True), approx=True)
            ctx_scr[:, :, lo:lo + hd] = jnp.einsum(
                'bqs,bsd->bqd', p.astype(jnp.bfloat16), vh,
                preferred_element_type=jnp.float32)                       # [B, beam, hd]

        ctx = ctx_scr[...].reshape(BB, H)

        # Fused output projection: one [BB,H]@[H,H] matmul on the full head-concatenated ctx.
        attn = jnp.dot(ctx.astype(jnp.bfloat16), wo_ref[0],
                       preferred_element_type=jnp.float32) + bo_ref[0]

        h1 = _layernorm(x + attn, ln1g_ref[0], ln1b_ref[0])
        ff = jnp.maximum(
            jnp.dot(h1.astype(jnp.bfloat16), w1_ref[0],
                    preferred_element_type=jnp.float32) + b1_ref[0], 0.0)
        ff = jnp.dot(ff.astype(jnp.bfloat16), w2_ref[0],
                     preferred_element_type=jnp.float32) + b2_ref[0]
        out_ref[...] = _layernorm(h1 + ff, ln2g_ref[0], ln2b_ref[0])

    return kernel


def make_greedy_vocab_kernel(tile_v, tiles_per_split):
    """Vocab projection + greedy argmax.
       grid = (num_splits [parallel], tiles_per_split [arbitrary]);
       running max / argmax are resident output blocks indexed by the split axis
       (each v7x TC keeps its own accumulator; the 2-way combine happens in the wrapper)."""
    INT_MAX = jnp.iinfo(jnp.int32).max

    def kernel(x_ref, w_ref, b_ref, max_ref, ids_ref):
        c = pl.program_id(0)
        j = pl.program_id(1)

        @pl.when(j == 0)
        def _():
            max_ref[...] = jnp.full(max_ref.shape, -jnp.inf, jnp.float32)
            ids_ref[...] = jnp.zeros(ids_ref.shape, jnp.int32)

        # NOTE: the reference divides by temperature before argmax; for temperature > 0 this
        # cannot change the argmax, so it is dropped from the hot per-token path.
        logits = jnp.dot(x_ref[...].astype(jnp.bfloat16), w_ref[...],
                         preferred_element_type=jnp.float32) + b_ref[...]   # [BB, tile_v]
        base = (c * tiles_per_split + j) * tile_v
        col = jax.lax.broadcasted_iota(jnp.int32, logits.shape, 1) + base
        m = jnp.max(logits, axis=-1, keepdims=True)                          # [BB, 1]
        a = jnp.min(jnp.where(logits >= m, col, INT_MAX), axis=-1, keepdims=True)
        better = m > max_ref[0]                    # strict > keeps earliest tile on ties
        ids_ref[0] = jnp.where(better, a, ids_ref[0])
        max_ref[0] = jnp.where(better, m, max_ref[0])

    return kernel


# ----------------------------------------------------------------------------
# Parameters (deterministic synthetic init — no checkpoint load). Big weights in bf16.
# ----------------------------------------------------------------------------
def init_params(key, cfg):
    H = cfg['head_num'] * cfg['head_size']
    M, I = cfg['mem_hidden_dim'], cfg['inter_size']
    V, L = cfg['vocab_size'], cfg['layer_num']

    def nrm(k, shape, s=0.05):
        return (jax.random.normal(k, shape, jnp.float32) * s).astype(jnp.bfloat16)

    ks = jax.random.split(key, 8)
    return dict(
        embedding=nrm(ks[0], (V, H), 0.1),
        w_vocab=nrm(ks[1], (H, V), 0.1),
        b_vocab=jnp.zeros((1, V), jnp.float32),
        # K|V fused weight per layer: [L, M, 2*H]
        wkv=nrm(ks[2], (L, M, 2 * H)), bkv=jnp.zeros((L, 1, 2 * H), jnp.float32),
        wq=nrm(ks[3], (L, H, H)), bq=jnp.zeros((L, 1, H), jnp.float32),
        wo=nrm(ks[4], (L, H, H)), bo=jnp.zeros((L, 1, H), jnp.float32),
        ln1g=jnp.ones((L, 1, H), jnp.float32), ln1b=jnp.zeros((L, 1, H), jnp.float32),
        w1=nrm(ks[5], (L, H, I)), b1=jnp.zeros((L, 1, I), jnp.float32),
        w2=nrm(ks[6], (L, I, H)), b2=jnp.zeros((L, 1, H), jnp.float32),
        ln2g=jnp.ones((L, 1, H), jnp.float32), ln2b=jnp.zeros((L, 1, H), jnp.float32),
    )


# ----------------------------------------------------------------------------
# CustomDecoding.forward equivalent
# ----------------------------------------------------------------------------
def custom_decoding_forward(params, cfg, batch_size, beam_size, seq_len,
                            memory, memory_seq_lens):
    assert cfg['temperature'] > 0.0  # dropping the temperature divide is argmax-invariant only then
    B, S, M = memory.shape
    assert B == batch_size
    BB = B * beam_size
    H = cfg['head_num'] * cfg['head_size']
    L, I, V = cfg['layer_num'], cfg['inter_size'], cfg['vocab_size']

    vmem_limit = _vmem_limit_bytes()

    # extended_memory = tile(memory, beam) / tile(memory_seq_lens, beam): NOT materialized.
    # Beams share memory bit-for-bit; the beam->batch map is done inside the attention kernel.
    mask = jnp.where(
        jnp.arange(S, dtype=jnp.int32)[None, :] < memory_seq_lens[:, None],
        0.0, -1e9).astype(jnp.float32)                                     # [B, S]

    # --- fused K/V projection: grid over (layer, row-tile), K and V as separate outputs ---
    rows = B * S
    rt = _pick_row_tile(rows)
    mem2d = memory.reshape(rows, M).astype(jnp.bfloat16)
    k_flat, v_flat = pl.pallas_call(
        make_kv_proj_kernel(H),
        out_shape=(jax.ShapeDtypeStruct((L, rows, H), jnp.bfloat16),
                   jax.ShapeDtypeStruct((L, rows, H), jnp.bfloat16)),
        grid=(L, rows // rt),
        in_specs=[
            pl.BlockSpec((rt, M), lambda l, r: (r, 0)),
            pl.BlockSpec((1, M, 2 * H), lambda l, r: (l, 0, 0)),
            pl.BlockSpec((1, 1, 2 * H), lambda l, r: (l, 0, 0)),
        ],
        out_specs=(pl.BlockSpec((1, rt, H), lambda l, r: (l, r, 0)),
                   pl.BlockSpec((1, rt, H), lambda l, r: (l, r, 0))),
        compiler_params=pltpu.CompilerParams(
            dimension_semantics=("parallel", "parallel"),
            vmem_limit_bytes=vmem_limit),
    )(mem2d, params['wkv'], params['bkv'])
    # Contiguous reshapes (no lane-split copies in HBM).
    k_all = k_flat.reshape(L, B, S, H)                                     # [L, B, S, H] bf16
    v_all = v_flat.reshape(L, B, S, H)

    # --- whole layer stack: ONE pallas_call per decode step, weights streamed per layer ---
    layer_call = pl.pallas_call(
        make_layer_stack_kernel(cfg['head_num'], cfg['head_size'], beam_size),
        out_shape=jax.ShapeDtypeStruct((BB, H), jnp.float32),
        grid=(L,),
        in_specs=[
            pl.BlockSpec((BB, H), lambda l: (0, 0)),             # x (token embedding)
            pl.BlockSpec((1, B, S, H), lambda l: (l, 0, 0, 0)),  # K (per layer)
            pl.BlockSpec((1, B, S, H), lambda l: (l, 0, 0, 0)),  # V (per layer)
            pl.BlockSpec((B, S), lambda l: (0, 0)),              # additive memory mask
            pl.BlockSpec((1, H, H), lambda l: (l, 0, 0)),        # wq
            pl.BlockSpec((1, 1, H), lambda l: (l, 0, 0)),        # bq
            pl.BlockSpec((1, H, H), lambda l: (l, 0, 0)),        # wo
            pl.BlockSpec((1, 1, H), lambda l: (l, 0, 0)),        # bo
            pl.BlockSpec((1, 1, H), lambda l: (l, 0, 0)),        # ln1g
            pl.BlockSpec((1, 1, H), lambda l: (l, 0, 0)),        # ln1b
            pl.BlockSpec((1, H, I), lambda l: (l, 0, 0)),        # w1
            pl.BlockSpec((1, 1, I), lambda l: (l, 0, 0)),        # b1
            pl.BlockSpec((1, I, H), lambda l: (l, 0, 0)),        # w2
            pl.BlockSpec((1, 1, H), lambda l: (l, 0, 0)),        # b2
            pl.BlockSpec((1, 1, H), lambda l: (l, 0, 0)),        # ln2g
            pl.BlockSpec((1, 1, H), lambda l: (l, 0, 0)),        # ln2b
        ],
        out_specs=pl.BlockSpec((BB, H), lambda l: (0, 0)),       # resident activation carrier
        scratch_shapes=[pltpu.VMEM((B, beam_size, H), jnp.float32)],   # per-head ctx scratch
        compiler_params=pltpu.CompilerParams(
            dimension_semantics=("arbitrary",),                  # sequential layer dependence
            vmem_limit_bytes=vmem_limit),
    )

    # --- vocab projection + greedy argmax: big lane-dense vocab tiles, optional 2-way split ---
    tile_v = _pick_tile_v(V, H, vmem_limit)
    num_splits = 2 if (V % (2 * tile_v) == 0 and V // tile_v >= 2) else 1
    tiles_per_split = V // (num_splits * tile_v)
    vocab_call = pl.pallas_call(
        make_greedy_vocab_kernel(tile_v, tiles_per_split),
        out_shape=(jax.ShapeDtypeStruct((num_splits, BB, 1), jnp.float32),
                   jax.ShapeDtypeStruct((num_splits, BB, 1), jnp.int32)),
        grid=(num_splits, tiles_per_split),
        in_specs=[
            pl.BlockSpec((BB, H), lambda c, j: (0, 0)),
            pl.BlockSpec((H, tile_v), lambda c, j: (0, c * tiles_per_split + j)),
            pl.BlockSpec((1, tile_v), lambda c, j: (0, c * tiles_per_split + j)),
        ],
        out_specs=(pl.BlockSpec((1, BB, 1), lambda c, j: (c, 0, 0)),
                   pl.BlockSpec((1, BB, 1), lambda c, j: (c, 0, 0))),
        compiler_params=pltpu.CompilerParams(
            dimension_semantics=("parallel", "arbitrary"),
            vmem_limit_bytes=vmem_limit),
    )

    end_id = cfg['end_id']
    layer_args = (params['wq'], params['bq'], params['wo'], params['bo'],
                  params['ln1g'], params['ln1b'], params['w1'], params['b1'],
                  params['w2'], params['b2'], params['ln2g'], params['ln2b'])

    def step(t, carry):
        cur, finished, seq_lens, out_ids = carry
        # TODO(synk): fold this gather into layer_call (PrefetchScalarGridSpec + pl.Element).
        x = params['embedding'][cur].astype(jnp.float32)                   # [BB, H]
        x = layer_call(x, k_all, v_all, mask, *layer_args)                 # full stack, one call
        maxv, idsv = vocab_call(x, params['w_vocab'], params['b_vocab'])
        best_m, best_i = maxv[0], idsv[0]
        for c in range(1, num_splits):     # static, tiny: combine per-split argmax partials
            take = maxv[c] > best_m        # strict > keeps lower-vocab split on ties
            best_i = jnp.where(take, idsv[c], best_i)
            best_m = jnp.where(take, maxv[c], best_m)
        ids = best_i[:, 0]                                                 # [BB] int32
        ids = jnp.where(finished, end_id, ids)
        out_ids = jax.lax.dynamic_update_slice(out_ids, ids[None, :], (t, 0))
        seq_lens = seq_lens + jnp.where(finished, 0, 1).astype(jnp.int32)
        finished = finished | (ids == end_id)
        return ids, finished, seq_lens, out_ids

    carry0 = (jnp.full((BB,), cfg['start_id'], jnp.int32),
              jnp.zeros((BB,), jnp.bool_),
              jnp.zeros((BB,), jnp.int32),
              jnp.zeros((seq_len, BB), jnp.int32))
    _, _, out_seq_lens, output_ids = jax.lax.fori_loop(0, seq_len, step, carry0)

    # output_ids: [seq_len, BB] -> [seq_len, B, beam] -> permute(1, 2, 0) -> [B, beam, seq_len]
    output_ids = output_ids.reshape(seq_len, B, beam_size).transpose(1, 2, 0)
    return output_ids, out_seq_lens


# ----------------------------------------------------------------------------
if __name__ == "__main__":
    cfg = dict(
        head_num=2, head_size=16, inter_size=64, mem_hidden_dim=32,
        layer_num=2, vocab_size=128, start_id=1, end_id=2,
        beam_search_diversity_rate=0.0, top_k=1, top_p=0.0,
        temperature=1.0, len_penalty=1.0, repetition_penalty=1.0,
    )
    batch_size, beam_size, seq_len, mem_seq = 2, 2, 6, 8

    key = jax.random.PRNGKey(0)
    k_param, k_mem = jax.random.split(key)
    params = init_params(k_param, cfg)

    memory = jax.random.normal(
        k_mem, (batch_size, mem_seq, cfg['mem_hidden_dim']), jnp.float32)
    memory_seq_lens = jnp.array([mem_seq, mem_seq - 3], dtype=jnp.int32)

    output_ids, out_seq_lens = custom_decoding_forward(
        params, cfg, batch_size, beam_size, seq_len, memory, memory_seq_lens)
    jax.block_until_ready((output_ids, out_seq_lens))

    assert output_ids.shape == (batch_size, beam_size, seq_len)
    assert out_seq_lens.shape == (batch_size * beam_size,)
    print("KERNEL_OK")
</pallas_src>

<mosaic_0001>
module attributes {stable_mosaic.version = 11 : i64} {
  func.func @kernel(%arg0: i32, %arg1: i32, %arg2: memref<16x32xbf16, #tpu.memory_space<vmem>>, %arg3: memref<1x32x64xbf16, #tpu.memory_space<vmem>>, %arg4: memref<1x1x64xf32, #tpu.memory_space<vmem>>, %arg5: memref<1x16x32xbf16, #tpu.memory_space<vmem>>, %arg6: memref<1x16x32xbf16, #tpu.memory_space<vmem>>) attributes {dimension_semantics = [#tpu.dimension_semantics<parallel>, #tpu.dimension_semantics<parallel>], iteration_bounds = array<i64: 2, 1>, scalar_prefetch = 0 : i64, scratch_operands = 0 : i64, tpu.core_type = #tpu.core_type<tc>, window_params = [{transform_indices = @transform_0, window_bounds = array<i64: 16, 32>}, {transform_indices = @transform_1, window_bounds = array<i64: 1, 32, 64>}, {transform_indices = @transform_2, window_bounds = array<i64: 1, 1, 64>}, {transform_indices = @transform_3, window_bounds = array<i64: 1, 16, 32>}, {transform_indices = @transform_4, window_bounds = array<i64: 1, 16, 32>}]} {
    %c0 = arith.constant 0 : index
    %c0_0 = arith.constant 0 : index
    %0 = vector.load %arg2[%c0, %c0_0] : memref<16x32xbf16, #tpu.memory_space<vmem>>, vector<16x32xbf16>
    %c0_1 = arith.constant 0 : index
    %c0_2 = arith.constant 0 : index
    %c0_3 = arith.constant 0 : index
    %1 = vector.load %arg3[%c0_1, %c0_2, %c0_3] : memref<1x32x64xbf16, #tpu.memory_space<vmem>>, vector<1x32x64xbf16>
    %2 = vector.shape_cast %1 : vector<1x32x64xbf16> to vector<32x64xbf16>
    %cst = arith.constant dense<0.000000e+00> : vector<16x64xf32>
    %3 = tpu.matmul %0, %2, %cst {dimension_numbers = #tpu.dot_dimension_numbers<[1], [0], [0], [1], [0, 0, 1, 1], [], []>} : vector<16x32xbf16>, vector<32x64xbf16>, vector<16x64xf32> -> vector<16x64xf32>
    %c0_4 = arith.constant 0 : index
    %c0_5 = arith.constant 0 : index
    %c0_6 = arith.constant 0 : index
    %4 = vector.load %arg4[%c0_4, %c0_5, %c0_6] : memref<1x1x64xf32, #tpu.memory_space<vmem>>, vector<1x1x64xf32>
    %5 = vector.shape_cast %4 : vector<1x1x64xf32> to vector<1x64xf32>
    %6 = vector.broadcast %5 : vector<1x64xf32> to vector<16x64xf32>
    %7 = arith.addf %3, %6 : vector<16x64xf32>
    %8 = vector.extract_strided_slice %7 {offsets = [0, 0], sizes = [16, 32], strides = [1, 1]} : vector<16x64xf32> to vector<16x32xf32>
    %9 = arith.truncf %8 : vector<16x32xf32> to vector<16x32xbf16>
    %c0_7 = arith.constant 0 : index
    %c0_8 = arith.constant 0 : index
    %c0_9 = arith.constant 0 : index
    %10 = vector.load %arg5[%c0_7, %c0_8, %c0_9] : memref<1x16x32xbf16, #tpu.memory_space<vmem>>, vector<1x16x32xbf16>
    %11 = vector.shape_cast %10 : vector<1x16x32xbf16> to vector<16x32xbf16>
    %12 = vector.shape_cast %9 : vector<16x32xbf16> to vector<1x16x32xbf16>
    tpu.vector_store %arg5[%c0_7, %c0_8, %c0_9], %12 {strides = array<i32>} : memref<1x16x32xbf16, #tpu.memory_space<vmem>>, vector<1x16x32xbf16>,
    %13 = vector.extract_strided_slice %7 {offsets = [0, 32], sizes = [16, 32], strides = [1, 1]} : vector<16x64xf32> to vector<16x32xf32>
    %14 = arith.truncf %13 : vector<16x32xf32> to vector<16x32xbf16>
    %c0_10 = arith.constant 0 : index
    %c0_11 = arith.constant 0 : index
    %c0_12 = arith.constant 0 : index
    %15 = vector.load %arg6[%c0_10, %c0_11, %c0_12] : memref<1x16x32xbf16, #tpu.memory_space<vmem>>, vector<1x16x32xbf16>
    %16 = vector.shape_cast %15 : vector<1x16x32xbf16> to vector<16x32xbf16>
    %17 = vector.shape_cast %14 : vector<16x32xbf16> to vector<1x16x32xbf16>
    tpu.vector_store %arg6[%c0_10, %c0_11, %c0_12], %17 {strides = array<i32>} : memref<1x16x32xbf16, #tpu.memory_space<vmem>>, vector<1x16x32xbf16>,
    return
  }
  func.func @transform_0(%arg0: i32, %arg1: i32) -> (i32, i32) {
    %c0_i32 = arith.constant 0 : i32
    %c0_i32_0 = arith.constant 0 : i32
    return %arg1, %c0_i32 : i32, i32
  }
  func.func @transform_1(%arg0: i32, %arg1: i32) -> (i32, i32, i32) {
    %c0_i32 = arith.constant 0 : i32
    %c0_i32_0 = arith.constant 0 : i32
    %c0_i32_1 = arith.constant 0 : i32
    return %arg0, %c0_i32, %c0_i32_0 : i32, i32, i32
  }
  func.func @transform_2(%arg0: i32, %arg1: i32) -> (i32, i32, i32) {
    %c0_i32 = arith.constant 0 : i32
    %c0_i32_0 = arith.constant 0 : i32
    %c0_i32_1 = arith.constant 0 : i32
    return %arg0, %c0_i32, %c0_i32_0 : i32, i32, i32
  }
  func.func @transform_3(%arg0: i32, %arg1: i32) -> (i32, i32, i32) {
    %c0_i32 = arith.constant 0 : i32
    %c0_i32_0 = arith.constant 0 : i32
    return %arg0, %arg1, %c0_i32 : i32, i32, i32
  }
  func.func @transform_4(%arg0: i32, %arg1: i32) -> (i32, i32, i32) {
    %c0_i32 = arith.constant 0 : i32
    %c0_i32_0 = arith.constant 0 : i32
    return %arg0, %arg1, %c0_i32 : i32, i32, i32
  }
}

</mosaic_0001>

<bundles_post_ra>
// kernel: tpu_custom_call.1
= control target key start
LH: loop header
LB: loop body
LE: loop exit
PB: predicated region body
PF: predicated region fallthrough
CT: control target
= control target key end

     0   :  { %s1138_s0 = inlined_call_operand.hbm [shape: bf16[16,32], index: 0, kind: input, shape index: {}]   ;;  %s1139_s1 = inlined_call_operand.hbm [shape: bf16[2,32,64], index: 1, kind: input, shape index: {}]   ;;  %s1140_s2 = inlined_call_operand.hbm [shape: f32[2,1,64], index: 2, kind: input, shape index: {}]   ;;  %s1141_s3 = inlined_call_operand.hbm [shape: bf16[2,16,32], index: 3, kind: output, shape index: {0}]   ;;  %s1142_s4 = inlined_call_operand.hbm [shape: bf16[2,16,32], index: 4, kind: output, shape index: {1}]  }
   0x1   :  { %1144 = sst [smem:[#allocation15_spill]] %s1138_s0 }
   0x2   :  { %10 = vsyncpa [#allocation3], 0 }
   0x3   :  { %11 = vsyncpa [#allocation6], 0 }
   0x4   :  { %13 = vsyncpa [#allocation6 + $0x1], 0 }
   0x5   :  { %14 = vsyncpa [#allocation4], 0 }
   0x6   :  { %16 = vsyncpa [#allocation4 + $0x1], 0 }
   0x7   :  { %17 = vsyncpa [#allocation10], 0 }
   0x8   :  { %19 = vsyncpa [#allocation10 + $0x1], 0  ;;  %s928_s15 = smov 0   ;;  %s930_s16 = smov 0  }
   0x9   :  { %s932_s17 = smov 0   ;;  %s934_s18 = smov 0  }
   0xa   :  { %s936_s19 = smov 0   ;;  %s938_s20 = smov 0  }
   0xb LB: > { %s37_s21 = sadd.s32 1, %s891_s19  ;;  %s70_s22 = sadd.s32 1, %s883_s17  ;;  %s895_s20 = sphi %s938_s20, %s25_s20   ;;  %s891_s19 = sphi %s936_s19, %s1157_s19   ;;  %s887_s18 = sphi %s934_s18, %s1156_s18   ;;  %s883_s17 = sphi %s932_s17, %s1155_s17   ;;  %s879_s16 = sphi %s930_s16, %s1154_s16   ;;  %s875_s15 = sphi %s928_s15, %s1153_s15  }
   0xc   : > { %p39_p0 = scmp.ge.s32.totalorder %s37_s21, 2  ;;  %p77_p1 = scmp.ne.s32.totalorder %s883_s17, %s879_s16 }
   0xd   : > { %p78_p2 = scmp.eq.s32.totalorder %s895_s20, 0  ;;  %p562_p4 = scmp.ge.s32.totalorder %s895_s20, 2 }
   0xe   : > { %s1159_s21 = smov (%p39_p0, %s37_s21), 0  ;;  %p629_p6 = scmp.lt.s32.totalorder %s895_s20, 2 }
   0xf   : > { %p968_p3 = por %p78_p2, %p77_p1  ;;  %s67_s24 = ssub.s32 %s891_s19, %s1159_s21 }
  0x10   : > { %p68_p5 = scmp.eq.s32.totalorder %s67_s24, 0  ;;  %s206_s25 = sand.u32 1, %s895_s20  }
  0x11   : > { %s208_s26 = sand.u32 1, %s883_s17   ;;  %s592_s29 = sshll.u32 %s891_s19, 4 }
  0x12   : > { %s979_s27 = scalar_select %p68_p5, %s883_s17, %s70_s22  }
  0x13   : > { %s563_s28 = sshll.u32 %s208_s26, 4  ;;  %s215_s6 = scalar_lea.hbm %s1139_s1, %s592_s29 }
  0x14   : > { %s210_s7 = scalar_lea.vmem [#allocation5], %s563_s28  ;;  %s216_s9 = sshll.u32 %s215_s6, 4  ;;  %s217_s9 = int_to_ptr.hbm [resolvable:$true] %s216_s9 }
  0x15   : > { %s218_s8 = sshll.u32 %s210_s7, 4  ;;  %p989_p7 = pnand %p629_p6, %p968_p3  ;;  %s219_s8 = int_to_ptr.vmem [resolvable:$true] %s218_s8 }
  0x16   : > { %s993_s11 = scalar_lea.sflag [#allocation6], %s206_s25  ;;  %s1143_s12 = smov 64  }
  0x17   : > { %s898_s13 = smov 4   ;;  %s1002_s14 = sadd.s32 4294967295, %s895_s20  }
  0x18   : > { %617 = dma.hbm_to_vmem [thread:$0]  (!%p989_p7), %s217_s9, 256, %s219_s8, %s993_s11, %s1143_s12, %s1143_s12, %s898_s13  }
  0x19   : > { %s559_s22 = sadd.s32 4294967294, %s895_s20   ;;  %p83_p8 = scmp.ne.s32.totalorder %s879_s16, %s875_s15 }
  0x1a   : > { %p84_p9 = scmp.eq.s32.totalorder %s1002_s14, 0  ;;  %p135_p10 = scmp.eq.s32.totalorder %s1002_s14, 1 }
  0x1b   : > { %p141_p11 = scmp.eq.s32.totalorder %s559_s22, 1  ;;  %p560_p12 = scmp.ge.s32.totalorder %s895_s20, 1 }
  0x1c   : > { %p1012_p13 = por %p84_p9, %p83_p8  ;;  %p1019_p0 = por %p135_p10, %p77_p1 }
  0x1d   : > { %p1023_p2 = por %p141_p11, %p83_p8  ;;  %p176_p3 = scmp.lt.s32.totalorder %s895_s20, 3 }
  0x1e   : > { %s1150_s0 = sld [smem:[#allocation15_spill]]  ;;  %s899_s6 = smov [#allocation2]  }
  0x1f   : > { %p1031_p5 = pnand %p560_p12, %p176_p3  ;;  %s192_s7 = sshll.u32 %s899_s6, 4  ;;  %s193_s7 = int_to_ptr.vmem [resolvable:$true] %s192_s7 }
  0x20   : > { %s234_s22 = scalar_lea.hbm %s1140_s2, %s891_s19  ;;  %s231_s29 = scalar_lea.vmem [#allocation7], %s208_s26 }
  0x21   : > { %p610_p1 = pneg %p1031_p5  ;;  %s236_s28 = sshll.u32 %s234_s22, 4  ;;  %s237_s28 = int_to_ptr.hbm [resolvable:$true] %s236_s28 }
  0x22   : > { %s238_s12 = sshll.u32 %s231_s29, 4  ;;  %247 = sbr.rel (%p1031_p5) target bundleno = 308 (0x134), region = 32  ;;  %s239_s12 = int_to_ptr.vmem [resolvable:$true] %s238_s12 }
  0x23   : > { %p611_p6 = pnand %p610_p1, %p84_p9 }
  0x24   : > { %s190_s30 = sshll.u32 %s1150_s0, 4  ;;  %s1152_s0 = smov 64   ;;  %s191_s30 = int_to_ptr.hbm [resolvable:$true] %s190_s30 }
  0x25   : > { %613 = dma.hbm_to_vmem [thread:$0]  (!%p611_p6), %s191_s30, 128, %s193_s7, [#allocation3], %s1152_s0, %s1152_s0, %s898_s13  }
  0x26   : > { %620 = dma.hbm_to_vmem [thread:$0]  (!%p989_p7), %s237_s28, 16, %s239_s12, %s993_s11  }
  0x27   : > { %858 = dma.done.wait (%p84_p9), [#allocation3], 128  }
  0x28   : > { %860 = vsyncadd (%p84_p9), [#allocation3], 4294967168  ;;  %s254_s26 = sand.u32 1, %s1002_s14   ;;  %s1059_s6 = sand.u32 1, %s879_s16  }
  0x29   : > { %s568_s8 = sshll.u32 %s1059_s6, 4  ;;  %s255_s0 = scalar_lea.sflag [#allocation6], %s254_s26 }
  0x2a   : > { %s258_s10 = scalar_lea.vmem [#allocation5], %s568_s8 }
  0x2b   : > { %862 = dma.done.wait (%p1012_p13), %s255_s0, 272  }
  0x2c   : > { %864 = vsyncadd (%p1012_p13), %s255_s0, 4294967024  ;;  %v595_v0 = vld [vmem:[%s258_s10 + $0x8] sm:$0xff]  ;;  %s267_s11 = scalar_lea.vmem [#allocation7], %s1059_s6  ;;  %v594_v1 = vld [vmem:[%s258_s10] sm:$0xff]  ;;  %vm333_vm0 = vcmask 261120   ;;  %s569_s12 = sshll.u32 %s1059_s6, 3 }
  0x2d   : > { %343 = vmatpush.bf16.msra.mxu0 %v595_v0  ;;  %v593_v2 = vld [vmem:[#allocation2] sm:$0xff]  ;;  %s596_s13 = sshll.u32 %s887_s18, 3  ;;  %vm353_vm1 = vcmask 257024   ;;  %s900_s5 = smov 96  }
  0x2e   : > { %v686_v3 = vld [vmem:[%s267_s11] ss:$0 sm:$0xff]  ;;  %s385_s30 = scalar_lea.hbm %s1141_s3, %s596_s13  ;;  %s294_s7 = scalar_lea.vmem [#allocation8], %s569_s12 }
  0x2f   : > { %s386_s9 = sshll.u32 %s294_s7, 4  ;;  %s388_s22 = sshll.u32 %s385_s30, 4  ;;  %s387_s9 = int_to_ptr.vmem [resolvable:$true] %s386_s9  ;;  %s389_s22 = int_to_ptr.hbm [resolvable:$true] %s388_s22 }
  0x30   : > { %s367_s28 = scalar_lea.sflag [#allocation4], %s1059_s6  ;;  %s791_s29 = sshra.s32 %s389_s22, 4  ;;  %s792_s29 = int_to_ptr.hbm [resolvable:$true] %s791_s29 }
  0x31   : > { %344 = vmatpush.bf16.msra.mxu0 %v594_v1  ;;  %s793_s26 = scalar_lea.hbm %s792_s29, 8  ;;  %s797_s10 = scalar_lea.hbm %s1141_s3, 16 }
  0x32   : > { %p794_p7 = scmp.ne.s32.totalorder %s792_s29, %s793_s26  ;;  %p798_p10 = scmp.lt.s32.totalorder %s792_s29, %s1141_s3 }
  0x33   : > { %p799_p11 = scmp.lt.s32.totalorder %s797_s10, %s793_s26 }
  0x34   : > { %583 = vmatmul.msk.bf16.vlgmr.msra.gmra.mxu0 %vm333_vm0, %v593_v2  ;;  %p795_p8 = pnand %p794_p7, %p1019_p0 }
  0x35   : > { %p800_p12 = por %p799_p11, %p798_p10 }
  0x36   : > { %p796_p9 = pneg %p795_p8 }
  0x38   : > { %p801_p13 = pnand %p800_p12, %p796_p9 }
  0xb1   : > { %v346_v4 = vpop.f32.mrf.mxu0 }
  0xb2   : > { %v347_v5 = vadd.f32 %v686_v3, %v346_v4 }
  0xb4   : > { %v351_v6 = vpack.c.bf16 %v347_v5, %v347_v5 }
  0xb6   : > { %358 = vrot.lane.b32.xlu0 %v351_v6, %s900_s5  ;;  %354 = vst.msk [vmem:[%s294_s7] sm:$0xf] %vm353_vm1, %v351_v6 }
  0xb9   : > { %v348_v7 = vpop.f32.mrf.mxu0 }
  0xba   : > { %v349_v8 = vadd.f32 %v686_v3, %v348_v7 }
  0xbc   : > { %v352_v9 = vpack.c.bf16 %v349_v8, %v349_v8 }
  0xbe   : > { %360 = vrot.lane.b32.xlu0 %v352_v9, %s900_s5  ;;  %355 = vst.msk [vmem:[%s294_s7 + $0x4] sm:$0xf] %vm353_vm1, %v352_v9 }
  0xbf   : > { %804 = shalt.err (!%p801_p13)
}
  0xc0   : > { %s901_s23 = smov 64   ;;  %s902_s30 = smov 4  }
  0xc1   : > { %606 = dma.vmem_to_hbm [thread:$0]  (%p1019_p0), %s387_s9, 128, %s389_s22, %s367_s28, %s901_s23, %s901_s23, %s902_s30  }
  0xc2   : > { %s301_s5 = scalar_lea.vmem [#allocation9], %s569_s12  ;;  %s404_s26 = scalar_lea.hbm %s1142_s4, %s596_s13 }
  0xc3   : > { %s405_s8 = sshll.u32 %s301_s5, 4  ;;  %s407_s0 = sshll.u32 %s404_s26, 4  ;;  %s406_s8 = int_to_ptr.vmem [resolvable:$true] %s405_s8  ;;  %s408_s0 = int_to_ptr.hbm [resolvable:$true] %s407_s0 }
  0xc4   : > { %s372_s10 = scalar_lea.sflag [#allocation10], %s1059_s6  ;;  %s819_s9 = sshra.s32 %s408_s0, 4  ;;  %s820_s9 = int_to_ptr.hbm [resolvable:$true] %s819_s9 }
  0xc5   : > { %s821_s22 = scalar_lea.hbm %s820_s9, 8  ;;  %s825_s28 = scalar_lea.hbm %s1142_s4, 16 }
  0xc6   : > { %p822_p3 = scmp.ne.s32.totalorder %s820_s9, %s821_s22  ;;  %p826_p6 = scmp.lt.s32.totalorder %s820_s9, %s1142_s4 }
  0xc7   : > { %p827_p7 = scmp.lt.s32.totalorder %s825_s28, %s821_s22 }
  0xc8   : > { %p823_p5 = pnand %p822_p3, %p1019_p0 }
  0xc9   : > { %p828_p8 = por %p827_p7, %p826_p6 }
  0xca   : > { %p824_p1 = pneg %p823_p5 }
  0xcc   : > { %p829_p9 = pnand %p828_p8, %p824_p1 }
 0x128   : > { %v359_v10 = vpop.permute.xlu0 %358 }
 0x129   : > { %364 = vst.msk [vmem:[%s301_s5] sm:$0xf] %vm353_vm1, %v359_v10 }
 0x130   : > { %v361_v11 = vpop.permute.xlu0 %360 }
 0x131   : > { %365 = vst.msk [vmem:[%s301_s5 + $0x4] sm:$0xf] %vm353_vm1, %v361_v11 }
 0x132   : > { %832 = shalt.err (!%p829_p9)
}
 0x133   : > { %607 = dma.vmem_to_hbm [thread:$0]  (%p1019_p0), %s406_s8, 128, %s408_s0, %s372_s10, %s901_s23, %s901_s23, %s902_s30  }
 0x134 PF: > { %s422_s6 = sand.u32 1, %s875_s15   ;;  %p622_p10 = pnand %p562_p4, %p1023_p2 }
 0x135   : > { %s423_s14 = scalar_lea.sflag [#allocation4], %s422_s6 }
 0x136   : > { %p623_p11 = pneg %p622_p10 }
 0x138   : > { %866 = dma.done.wait (%p623_p11), %s423_s14, 128  }
 0x139   : > { %868 = vsyncadd (%p623_p11), %s423_s14, 4294967168  ;;  %s433_s5 = scalar_lea.sflag [#allocation10], %s422_s6 }
 0x13a   : > { %870 = dma.done.wait (%p623_p11), %s433_s5, 128  }
 0x13b   : > { %872 = vsyncadd (%p623_p11), %s433_s5, 4294967168  ;;  %s25_s20 = sadd.s32 1, %s895_s20   ;;  %s1153_s15 = smov %s879_s16 }
 0x13c   : > { %p22_p12 = scmp.ge.s32.totalorder %s25_s20, 4   ;;  %s1154_s16 = smov %s883_s17 }
 0x13d   : > { %s1155_s17 = smov %s979_s27  ;;  %s1156_s18 = smov %s891_s19 }
 0x13e   : > { %s1157_s19 = smov %s1159_s21  ;;  %24 = sbr.rel (!%p22_p12) target bundleno = 11 (0xb), region = 111 }
 0x143   :  { %439 = vsyncpa [#allocation3], 1 }
 0x144   :  { %441 = vsyncpa [#allocation3 + $0x1], 1 }
 0x145   :  { %442 = vsyncpa [#allocation6], 1 }
 0x146   :  { %444 = vsyncpa [#allocation6 + $0x1], 1 }
 0x147   :  { %445 = vsyncpa [#allocation4], 1 }
 0x148   :  { %447 = vsyncpa [#allocation4 + $0x1], 1 }
 0x149   :  { %448 = vsyncpa [#allocation10], 1 }
 0x14a   :  { %450 = vsyncpa [#allocation10 + $0x1], 1 }

</bundles_post_ra>
